<compile_context>
chip_gen: v7x
topology: tpu7x:2x2x1
jax: 0.10.0
libtpu: 0.0.40
codegen_flags: <defaults>
</compile_context>

<pallas_src>
import functools

import jax
import jax.numpy as jnp
from jax.experimental import pallas as pl
from jax.experimental.pallas import tpu as pltpu

LANE = 128   # feature padding (128-wide; good default on v5e, fine on v6e/v7x)
TM = 128     # node-row tile
TK = 128     # neighbor (reduction) tile
NEG_BIG = -1e30  # mask value for padded logit lanes before log_softmax


def _round_up(v, m):
    return (v + m - 1) // m * m


# ---------------------------------------------------------------------------
# Kernel 1: fused feature transform  xw = x @ [W_l | W_r]
# ---------------------------------------------------------------------------
def _xform_kernel(x_ref, w_ref, o_ref):
    o_ref[...] = jnp.dot(
        x_ref[...], w_ref[...], preferred_element_type=jnp.float32
    ).astype(o_ref.dtype)


# ---------------------------------------------------------------------------
# Kernel 2: tiled aggregation  out = adj @ (x W_l) + (x W_r) + b  [+ ReLU | log_softmax]
# grid = (row tiles [parallel], reduction tiles [arbitrary]); f32 accumulator scratch.
# ---------------------------------------------------------------------------
def _agg_kernel(a_ref, hl_ref, hr_ref, b_ref, o_ref, acc_ref,
                *, f_out, apply_relu, apply_log_softmax):
    k = pl.program_id(1)

    @pl.when(k == 0)
    def _():
        acc_ref[...] = jnp.zeros_like(acc_ref)

    # acc += adj_tile @ (x @ W_l)_tile   (bf16 MXU inputs, f32 accumulation)
    acc_ref[...] += jnp.dot(a_ref[...], hl_ref[...],
                            preferred_element_type=jnp.float32)

    @pl.when(k == pl.num_programs(1) - 1)
    def _():
        out = acc_ref[...] + hr_ref[...].astype(jnp.float32) + b_ref[...]
        if apply_relu:
            out = jnp.maximum(out, 0.0)
            # TODO(synk): F.dropout is identity in eval mode (training=False); not applied.
        if apply_log_softmax:
            # mask padded lanes so they don't affect the max / sum reductions
            col = jax.lax.broadcasted_iota(jnp.int32, out.shape, 1)
            out = jnp.where(col < f_out, out, NEG_BIG)
            m = jnp.max(out, axis=-1, keepdims=True)
            s = out - m
            lse = jnp.log(jnp.sum(jnp.exp(s), axis=-1, keepdims=True))
            out = s - lse
        o_ref[...] = out.astype(o_ref.dtype)


# ---------------------------------------------------------------------------
# Per-layer wrapper (inputs already padded / bf16)
# ---------------------------------------------------------------------------
def sage_layer(adj_p, x_p, w_cat_p, b_p, *, f_out, apply_relu,
               apply_log_softmax, out_dtype):
    n_pad, f_in_pad = x_p.shape
    f_out_pad = w_cat_p.shape[1] // 2

    # --- feature transform: xw = x @ [W_l | W_r] ---
    xw = pl.pallas_call(
        _xform_kernel,
        out_shape=jax.ShapeDtypeStruct((n_pad, 2 * f_out_pad), jnp.bfloat16),
        grid_spec=pltpu.PrefetchScalarGridSpec(
            num_scalar_prefetch=0,
            grid=(n_pad // TM,),
            in_specs=[pl.BlockSpec((TM, f_in_pad), lambda i: (i, 0)),
                      pl.BlockSpec((f_in_pad, 2 * f_out_pad), lambda i: (0, 0))],
            out_specs=pl.BlockSpec((TM, 2 * f_out_pad), lambda i: (i, 0)),
        ),
        compiler_params=pltpu.CompilerParams(dimension_semantics=("parallel",)),
    )(x_p, w_cat_p)

    # --- aggregation + bias + activation (tiled, accumulator) ---
    kernel = functools.partial(
        _agg_kernel, f_out=f_out,
        apply_relu=apply_relu, apply_log_softmax=apply_log_softmax)

    out = pl.pallas_call(
        kernel,
        out_shape=jax.ShapeDtypeStruct((n_pad, f_out_pad), out_dtype),
        grid_spec=pltpu.PrefetchScalarGridSpec(
            num_scalar_prefetch=0,
            grid=(n_pad // TM, n_pad // TK),
            in_specs=[
                pl.BlockSpec((TM, TK), lambda i, k: (i, k)),          # adj tile
                pl.BlockSpec((TK, f_out_pad), lambda i, k: (k, 0)),   # xw[:, :F]  = x @ W_l
                pl.BlockSpec((TM, f_out_pad), lambda i, k: (i, 1)),   # xw[:, F:]  = x @ W_r
                pl.BlockSpec((1, f_out_pad), lambda i, k: (0, 0)),    # bias
            ],
            out_specs=pl.BlockSpec((TM, f_out_pad), lambda i, k: (i, 0)),
            scratch_shapes=[pltpu.VMEM((TM, f_out_pad), jnp.float32)],
        ),
        compiler_params=pltpu.CompilerParams(
            dimension_semantics=("parallel", "arbitrary")),
    )(adj_p, xw, xw, b_p)
    return out


# ---------------------------------------------------------------------------
# Full forward (pads once, loops layers)
# ---------------------------------------------------------------------------
def sage_forward(x, adj, params):
    """params: list of (W_l, W_r, b_l) per layer, un-padded f32."""
    n, f_in = x.shape
    n_pad = _round_up(max(n, TM), TM)           # TM == TK
    f_in_pad = _round_up(f_in, LANE)

    adj_p = jnp.zeros((n_pad, n_pad), jnp.bfloat16)
    adj_p = adj_p.at[:n, :n].set(adj.astype(jnp.bfloat16))
    h = jnp.zeros((n_pad, f_in_pad), jnp.bfloat16)
    h = h.at[:n, :f_in].set(x.astype(jnp.bfloat16))

    n_layers = len(params)
    for i, (w_l, w_r, b_l) in enumerate(params):
        last = i == n_layers - 1
        f_i, f_o = w_l.shape
        f_i_pad = _round_up(f_i, LANE)
        f_o_pad = _round_up(f_o, LANE)
        assert h.shape[1] == f_i_pad

        w_cat = jnp.zeros((f_i_pad, 2 * f_o_pad), jnp.bfloat16)
        w_cat = w_cat.at[:f_i, :f_o].set(w_l.astype(jnp.bfloat16))
        w_cat = w_cat.at[:f_i, f_o_pad:f_o_pad + f_o].set(w_r.astype(jnp.bfloat16))
        b_p = jnp.zeros((1, f_o_pad), jnp.float32).at[:, :f_o].set(
            b_l.astype(jnp.float32))

        h = sage_layer(adj_p, h, w_cat, b_p,
                       f_out=f_o,
                       apply_relu=not last,
                       apply_log_softmax=last,
                       out_dtype=jnp.float32 if last else jnp.bfloat16)

    f_out_final = params[-1][0].shape[1]
    return h[:n, :f_out_final]


# ---------------------------------------------------------------------------
# Helpers: dense normalized adjacency + parameter init + pure-JAX reference
# ---------------------------------------------------------------------------
def build_normalized_adjacency(edge_index, num_nodes):
    """edge_index: [2, E], row 0 = source, row 1 = target (PyG convention).
    A[t, s] = (#edges s->t) / deg_in(t)   (mean aggregation)."""
    src, tgt = edge_index[0], edge_index[1]
    a = jnp.zeros((num_nodes, num_nodes), jnp.float32)
    a = a.at[tgt, src].add(1.0)
    deg = jnp.clip(jnp.sum(a, axis=1, keepdims=True), 1.0, None)
    return a / deg


def init_params(key, in_channels, hidden_channels, out_channels, num_layers):
    dims = [in_channels] + [hidden_channels] * (num_layers - 1) + [out_channels]
    params = []
    for i in range(num_layers):
        f_in, f_out = dims[i], dims[i + 1]
        key, k1, k2 = jax.random.split(key, 3)
        scale = 1.0 / jnp.sqrt(jnp.float32(f_in))
        w_l = jax.random.uniform(k1, (f_in, f_out), jnp.float32, -scale, scale)
        w_r = jax.random.uniform(k2, (f_in, f_out), jnp.float32, -scale, scale)
        b_l = jnp.zeros((1, f_out), jnp.float32)
        params.append((w_l, w_r, b_l))
    return params


def sage_forward_ref(x, adj, params):
    n_layers = len(params)
    h = x
    for i, (w_l, w_r, b_l) in enumerate(params):
        out = (adj @ h) @ w_l + h @ w_r + b_l
        if i < n_layers - 1:
            h = jnp.maximum(out, 0.0)
        else:
            h = jax.nn.log_softmax(out, axis=-1)
    return h


if __name__ == "__main__":
    key = jax.random.PRNGKey(0)

    num_nodes = 200         # padded internally to 256 -> 2x2 grid on the agg kernel
    num_edges = 800
    in_channels = 16
    hidden_channels = 32
    out_channels = 8
    num_layers = 3
    dropout = 0.5           # identity in eval mode

    key, k_x, k_src, k_tgt, k_p = jax.random.split(key, 5)
    x = jax.random.normal(k_x, (num_nodes, in_channels), jnp.float32)
    src = jax.random.randint(k_src, (num_edges,), 0, num_nodes)
    tgt = jax.random.randint(k_tgt, (num_edges,), 0, num_nodes)
    edge_index = jnp.stack([src, tgt], axis=0)

    adj = build_normalized_adjacency(edge_index, num_nodes)
    params = init_params(k_p, in_channels, hidden_channels, out_channels, num_layers)

    out = sage_forward(x, adj, params)
    out = jax.block_until_ready(out)

    assert out.shape == (num_nodes, out_channels)

    # log_softmax rows must exponentiate-sum to ~1
    row_sums = jnp.sum(jnp.exp(out), axis=-1)
    assert jnp.allclose(row_sums, 1.0, atol=1e-3), row_sums

    # loose comparison against the f32 pure-JAX reference (kernel uses bf16 MXU inputs)
    ref = sage_forward_ref(x, adj, params)
    assert jnp.allclose(out, ref, atol=0.15), float(jnp.max(jnp.abs(out - ref)))

    print("KERNEL_OK")
</pallas_src>

<mosaic_0001>
module attributes {stable_mosaic.version = 11 : i64} {
  func.func @_xform_kernel(%arg0: i32, %arg1: memref<128x128xbf16, #tpu.memory_space<vmem>>, %arg2: memref<128x256xbf16, #tpu.memory_space<vmem>>, %arg3: memref<128x256xbf16, #tpu.memory_space<vmem>>) attributes {dimension_semantics = [#tpu.dimension_semantics<parallel>], iteration_bounds = array<i64: 2>, scalar_prefetch = 0 : i64, scratch_operands = 0 : i64, tpu.core_type = #tpu.core_type<tc>, window_params = [{transform_indices = @transform_0, window_bounds = array<i64: 128, 128>}, {pipeline_mode = #tpu.pipeline_mode<synchronous>, transform_indices = @transform_1, window_bounds = array<i64: 128, 256>}, {transform_indices = @transform_2, window_bounds = array<i64: 128, 256>}]} {
    %c0 = arith.constant 0 : index
    %c0_0 = arith.constant 0 : index
    %0 = vector.load %arg1[%c0, %c0_0] : memref<128x128xbf16, #tpu.memory_space<vmem>>, vector<128x128xbf16>
    %c0_1 = arith.constant 0 : index
    %c0_2 = arith.constant 0 : index
    %1 = vector.load %arg2[%c0_1, %c0_2] : memref<128x256xbf16, #tpu.memory_space<vmem>>, vector<128x256xbf16>
    %cst = arith.constant dense<0.000000e+00> : vector<128x256xf32>
    %2 = tpu.matmul %0, %1, %cst {dimension_numbers = #tpu.dot_dimension_numbers<[1], [0], [0], [1], [0, 0, 1, 1], [], []>} : vector<128x128xbf16>, vector<128x256xbf16>, vector<128x256xf32> -> vector<128x256xf32>
    %3 = arith.truncf %2 : vector<128x256xf32> to vector<128x256xbf16>
    %c0_3 = arith.constant 0 : index
    %c0_4 = arith.constant 0 : index
    %4 = vector.load %arg3[%c0_3, %c0_4] : memref<128x256xbf16, #tpu.memory_space<vmem>>, vector<128x256xbf16>
    tpu.vector_store %arg3[%c0_3, %c0_4], %3 {strides = array<i32>} : memref<128x256xbf16, #tpu.memory_space<vmem>>, vector<128x256xbf16>,
    return
  }
  func.func @transform_0(%arg0: i32) -> (i32, i32) {
    %c0_i32 = arith.constant 0 : i32
    %c0_i32_0 = arith.constant 0 : i32
    return %arg0, %c0_i32 : i32, i32
  }
  func.func @transform_1(%arg0: i32) -> (i32, i32) {
    %c0_i32 = arith.constant 0 : i32
    %c0_i32_0 = arith.constant 0 : i32
    %c0_i32_1 = arith.constant 0 : i32
    return %c0_i32, %c0_i32_0 : i32, i32
  }
  func.func @transform_2(%arg0: i32) -> (i32, i32) {
    %c0_i32 = arith.constant 0 : i32
    %c0_i32_0 = arith.constant 0 : i32
    return %arg0, %c0_i32 : i32, i32
  }
}

</mosaic_0001>

<bundles_post_ra>
// kernel: tpu_custom_call.1
= control target key start
LH: loop header
LB: loop body
LE: loop exit
PB: predicated region body
PF: predicated region fallthrough
CT: control target
= control target key end

     0   :  { %7 = vsyncpa [#allocation3], 0  ;;  %s1245_s0 = inlined_call_operand.hbm [shape: bf16[256,128], index: 0, kind: input, shape index: {}]   ;;  %s1246_s1 = inlined_call_operand.hbm [shape: bf16[128,256], index: 1, kind: input, shape index: {}]   ;;  %s1247_s2 = inlined_call_operand.hbm [shape: bf16[256,256], index: 2, kind: output, shape index: {}]  }
   0x1   :  { %9 = vsyncpa [#allocation3 + $0x1], 0 }
   0x2   :  { %10 = vsyncpa [#allocation6], 0 }
   0x3   :  { %11 = vsyncpa [#allocation4], 0 }
   0x4   :  { %13 = vsyncpa [#allocation4 + $0x1], 0  ;;  %s1006_s9 = smov 0   ;;  %s1008_s10 = smov 0  }
   0x5   :  { %s1010_s11 = smov 0   ;;  %s1012_s12 = smov 0  }
   0x6 LB: > { %s1027_s13 = sadd.s32 4294967295, %s979_s12   ;;  %s663_s14 = sadd.s32 4294967294, %s979_s12   ;;  %s979_s12 = sphi %s1012_s12, %s1267_s12   ;;  %s975_s11 = sphi %s1010_s11, %s1266_s11   ;;  %s971_s10 = sphi %s1008_s10, %s1265_s10   ;;  %s967_s9 = sphi %s1006_s9, %s1264_s9  }
   0x7   : > { %p39_p0 = scmp.ne.s32.totalorder %s971_s10, %s967_s9  ;;  %p1248_p1 = scmp.eq.s32.totalorder %s1027_s13, 0 }
   0x8   : > { %p90_p3 = scmp.eq.s32.totalorder %s663_s14, 1  ;;  %p664_p5 = scmp.ge.s32.totalorder %s979_s12, 1 }
   0x9   : > { %p1036_p4 = por %p1248_p1, %p39_p0  ;;  %p97_p7 = scmp.lt.s32.totalorder %s979_s12, 3 }
   0xa   : > { %p1041_p6 = por %p90_p3, %p39_p0  ;;  %s981_s18 = smov [#allocation5]  }
   0xb   : > { %s1251_s15 = scalar_select %p1036_p4, 1, 0 }
   0xc   : > { %s1252_s16 = scalar_select %p1041_p6, 1, 0 }
   0xd   : > { %p1046_p8 = pnand %p664_p5, %p97_p7  ;;  %s109_s19 = sshll.u32 %s981_s18, 4  ;;  %s1050_s19 = int_to_ptr.vmem [resolvable:$true] %s109_s19 }
   0xe   : > { %s1062_s21 = sadd.s32 1, %s979_s12   ;;  %s26_s22 = sadd.s32 1, %s975_s11 }
   0xf   : > { %s1253_s17 = scalar_select %p1046_p8, 1, 0 }
  0x10   : > { %p763_p9 = pneg %p1046_p8  ;;  %s23_s23 = ssub.s32 %s979_s12, %s1062_s21 }
  0x11   : > { %s851_s26 = scalar_lea.hbm %s1246_s1, 2048 }
  0x12   : > { %p1057_p11 = pnand %p763_p9, %p1248_p1  ;;  %p852_p12 = scmp.ne.s32.totalorder %s1246_s1, %s851_s26 }
  0x13   : > { %p858_p5 = scmp.lt.u32.totalorder %s851_s26, %s1246_s1 }
  0x14   : > { %p853_p13 = pneg %p1057_p11 }
  0x16   : > { %p854_p0 = pnand %p853_p13, %p852_p12 }
  0x18   : > { %p855_p3 = pneg %p854_p0 }
  0x1a   : > { %p860_p7 = pnand %p858_p5, %p855_p3 }
  0x1c   : > { %863 = shalt.err (!%p860_p7)
}
  0x1d   : > { %s864_s3 = scalar_lea.vmem %s1050_s19, 2048  ;;  %p872_p2 = scmp.lt.s32.totalorder %s1050_s19, %s1050_s19 }
  0x1e   : > { %p865_p9 = scmp.ne.s32.totalorder %s1050_s19, %s864_s3  ;;  %p873_p6 = scmp.lt.s32.totalorder %s864_s3, %s864_s3 }
  0x20   : > { %p867_p10 = pnand %p865_p9, %p853_p13  ;;  %p874_p4 = por %p873_p6, %p872_p2 }
  0x22   : > { %p868_p1 = pneg %p867_p10 }
  0x24   : > { %p875_p8 = pnand %p874_p4, %p868_p1 }
  0x26   : > { %878 = shalt.err (!%p875_p8)
}
  0x27   : > { %s982_s4 = smov 128   ;;  %s983_s5 = smov 8  }
  0x28   : > { %766 = dma.hbm_to_vmem [thread:$0]  (!%p1057_p11), %s1246_s1, 2048, %s1050_s19, [#allocation6], %s982_s4, %s982_s4, %s983_s5  }
  0x29   : > { %p24_p2 = scmp.eq.s32.totalorder %s23_s23, 0  ;;  %p33_p1 = scmp.ne.s32.totalorder %s975_s11, %s971_s10 }
  0x2a   : > { %p34_p4 = scmp.eq.s32.totalorder %s979_s12, 0  ;;  %p776_p6 = scmp.lt.s32.totalorder %s979_s12, 2 }
  0x2b   : > { %s1093_s8 = scalar_select %p24_p2, %s975_s11, %s26_s22  }
  0x2c   : > { %p35_p8 = por %p34_p4, %p33_p1  ;;  %p1255_p10 = scmp.eq.s32.totalorder %s1027_s13, 1 }
  0x2d   : > { %s123_s18 = sand.u32 1, %s975_s11   ;;  %s720_s24 = sshll.u32 %s979_s12, 10 }
  0x2e   : > { %p1097_p12 = por %p1255_p10, %p33_p1  ;;  %s667_s25 = sshll.u32 %s123_s18, 6 }
  0x2f   : > { %s1106_s27 = scalar_lea.hbm %s1245_s0, %s720_s24  ;;  %s127_s19 = scalar_lea.vmem [#allocation2], %s667_s25 }
  0x30   : > { %s134_s22 = sshll.u32 %s127_s19, 4  ;;  %p1108_p11 = pnand %p776_p6, %p35_p8  ;;  %s1112_s22 = int_to_ptr.vmem [resolvable:$true] %s134_s22 }
  0x31   : > { %s1114_s28 = scalar_lea.sflag [#allocation3], %s123_s18  ;;  %s879_s29 = scalar_lea.hbm %s1106_s27, 1024 }
  0x32   : > { %p880_p13 = scmp.ne.s32.totalorder %s1106_s27, %s879_s29  ;;  %p881_p0 = pneg %p1108_p11 }
  0x33   : > { %s884_s4 = scalar_lea.hbm %s1245_s0, 2048  ;;  %p885_p7 = scmp.lt.u32.totalorder %s1106_s27, %s1245_s0 }
  0x34   : > { %p882_p3 = pnand %p881_p0, %p880_p13  ;;  %p886_p9 = scmp.lt.u32.totalorder %s884_s4, %s879_s29 }
  0x35   : > { %p888_p1 = scmp.lt.u32.totalorder %s879_s29, %s1106_s27 }
  0x36   : > { %p883_p5 = pneg %p882_p3  ;;  %p887_p2 = por %p886_p9, %p885_p7 }
  0x38   : > { %p889_p4 = por %p888_p1, %p887_p2 }
  0x3a   : > { %p890_p6 = pnand %p889_p4, %p883_p5 }
  0x3c   : > { %893 = shalt.err (!%p890_p6)
}
  0x3d   : > { %s894_s7 = scalar_lea.vmem %s1112_s22, 1024  ;;  %s984_s18 = smov [#allocation2]  }
  0x3e   : > { %p895_p8 = scmp.ne.s32.totalorder %s1112_s22, %s894_s7  ;;  %s899_s24 = sshll.u32 %s984_s18, 4  ;;  %s900_s24 = int_to_ptr.vmem [resolvable:$false] %s899_s24 }
  0x3f   : > { %s901_s25 = scalar_lea.vmem %s900_s24, 2048  ;;  %p902_p3 = scmp.lt.s32.totalorder %s1112_s22, %s900_s24 }
  0x40   : > { %p897_p10 = pnand %p895_p8, %p881_p0  ;;  %p903_p7 = scmp.lt.s32.totalorder %s901_s25, %s894_s7 }
  0x42   : > { %p898_p13 = pneg %p897_p10  ;;  %p904_p9 = por %p903_p7, %p902_p3 }
  0x44   : > { %p905_p2 = pnand %p904_p9, %p898_p13 }
  0x46   : > { %908 = shalt.err (!%p905_p2)
}
  0x47   : > { %s985_s20 = smov 64   ;;  %s986_s26 = smov 4  }
  0x48   : > { %770 = dma.hbm_to_vmem [thread:$0]  (!%p1108_p11), %s1106_s27, 1024, %s1112_s22, %s1114_s28, %s985_s20, %s985_s20, %s986_s26  }
  0x49   : > { %p1258_p0 = scmp.ne.s32.totalorder %s1253_s17, 0 }
  0x4a   : > { %s1145_s19 = sand.u32 (!%p1258_p0), 1, %s971_s10   ;;  %p1259_p5 = scmp.ne.s32.totalorder (!%p1258_p0), %s1251_s15, 0 }
  0x4b   : > { %146 = sbr.rel (%p1258_p0) target bundleno = 376 (0x178), region = 28  ;;  %s671_s29 = sshll.u32 (!%p1258_p0), %s1145_s19, 6 }
  0x4c   : > { %s149_s30 = scalar_lea.sflag (!%p1258_p0), [#allocation3], %s1145_s19  ;;  %s1149_s3 = scalar_lea.vmem (!%p1258_p0), [#allocation2], %s671_s29 }
  0x52   : > { %954 = dma.done.wait (%p1259_p5), %s149_s30, 1024  }
  0x53   : > { %956 = vsyncadd (%p1259_p5), %s149_s30, 4294966272  ;;  %p1260_p11 = scmp.eq.s32.totalorder %s1027_s13, 0 }
  0x55   : > { %958 = dma.done.wait (%p1260_p11), [#allocation6], 2048   ;;  %p1261_p1 = pmov %p1260_p11 }
  0x56   : > { %v987_v0 = vmov 0   ;;  %v819_v1 = vld [vmem:[#allocation5 + $0x4] ss:$8 sps:$4 sm:$0xff]   ;;  %v821_v2 = vld [vmem:[#allocation5] ss:$8 sps:$4 sm:$0xff]   ;;  %v847_v21 = vld [vmem:[%s1149_s3 + $0x10] sm:$0xff]  }
  0x57   : > { %960 = vsyncadd (%p1261_p1), [#allocation6], 4294965248  ;;  %372 = vmatprep.mubr.bf16.mxu0 %v987_v0  ;;  %412 = vmatprep.mubr.bf16.mxu1 %v987_v0  ;;  %v822_v3 = vld [vmem:[#allocation5 + $0x14] ss:$8 sps:$4 sm:$0xff]   ;;  %v824_v4 = vld [vmem:[#allocation5 + $0x10] ss:$8 sps:$4 sm:$0xff]  }
  0x58   : > { %340 = vmatprep.subr.bf16.mxu0 %v819_v1  ;;  %739 = vmatprep.subr.bf16.mxu1 %v819_v1  ;;  %v825_v5 = vld [vmem:[#allocation5 + $0x24] ss:$8 sps:$4 sm:$0xff]   ;;  %v827_v6 = vld [vmem:[#allocation5 + $0x20] ss:$8 sps:$4 sm:$0xff]   ;;  %v828_v7 = vld [vmem:[#allocation5 + $0x34] ss:$8 sps:$4 sm:$0xff]  }
  0x59   : > { %341 = vmatpush1.bf16.msra.mxu0 %v821_v2  ;;  %747 = vmatpush1.bf16.msra.mxu1 %v821_v2  ;;  %v830_v8 = vld [vmem:[#allocation5 + $0x30] ss:$8 sps:$4 sm:$0xff]   ;;  %v831_v9 = vld [vmem:[#allocation5 + $0x44] ss:$8 sps:$4 sm:$0xff]   ;;  %v833_v10 = vld [vmem:[#allocation5 + $0x40] ss:$8 sps:$4 sm:$0xff]  }
  0x5a   : > { %342 = vmatprep.subr.bf16.mxu0 %v822_v3  ;;  %740 = vmatprep.subr.bf16.mxu1 %v822_v3  ;;  %v834_v11 = vld [vmem:[#allocation5 + $0x54] ss:$8 sps:$4 sm:$0xff]   ;;  %v836_v12 = vld [vmem:[#allocation5 + $0x50] ss:$8 sps:$4 sm:$0xff]   ;;  %v837_v13 = vld [vmem:[#allocation5 + $0x64] ss:$8 sps:$4 sm:$0xff]  }
  0x5b   : > { %v839_v14 = vld [vmem:[#allocation5 + $0x60] ss:$8 sps:$4 sm:$0xff]   ;;  %v840_v15 = vld [vmem:[#allocation5 + $0x74] ss:$8 sps:$4 sm:$0xff]   ;;  %v842_v16 = vld [vmem:[#allocation5 + $0x70] ss:$8 sps:$4 sm:$0xff]  }
  0x5c   : > { %v843_v17 = vld [vmem:[%s1149_s3] sm:$0xff]   ;;  %v845_v19 = vld [vmem:[%s1149_s3 + $0x8] sm:$0xff]   ;;  %v848_v22 = vld [vmem:[%s1149_s3 + $0x30] sm:$0xff]   ;;  %s673_s15 = sshll.u32 %s1145_s19, 7  ;;  %s738_s27 = sshll.u32 %s1027_s13, 11 }
  0x5d   : > { %343 = vmatpush1.bf16.msra.mxu0 %v824_v4  ;;  %748 = vmatpush1.bf16.msra.mxu1 %v824_v4  ;;  %v844_v18 = vld [vmem:[%s1149_s3 + $0x20] sm:$0xff]   ;;  %v846_v20 = vld [vmem:[%s1149_s3 + $0x28] sm:$0xff]   ;;  %v849_v23 = vld [vmem:[%s1149_s3 + $0x18] sm:$0xff]   ;;  %s1176_s17 = scalar_lea.vmem [#allocation7], %s673_s15  ;;  %s1195_s4 = scalar_lea.hbm %s1247_s2, %s738_s27 }
  0x5e   : > { %344 = vmatprep.subr.bf16.mxu0 %v825_v5  ;;  %741 = vmatprep.subr.bf16.mxu1 %v825_v5  ;;  %v850_v24 = vld [vmem:[%s1149_s3 + $0x38] sm:$0xff]   ;;  %s580_s22 = sshll.u32 %s1176_s17, 4  ;;  %s566_s13 = scalar_lea.sflag [#allocation4], %s1145_s19  ;;  %s1197_s22 = int_to_ptr.vmem [resolvable:$true] %s580_s22 }
  0x5f   : > { %s909_s5 = scalar_lea.vmem %s1197_s22, 2048  ;;  %s988_s6 = smov [#allocation7]  }
  0x60   : > { %p910_p4 = scmp.ne.s32.totalorder %s1197_s22, %s909_s5  ;;  %s913_s7 = sshll.u32 %s988_s6, 4  ;;  %s914_s7 = int_to_ptr.vmem [resolvable:$false] %s913_s7 }
  0x61   : > { %345 = vmatpush1.bf16.msra.mxu0 %v827_v6  ;;  %749 = vmatpush1.bf16.msra.mxu1 %v827_v6  ;;  %s915_s18 = scalar_lea.vmem %s914_s7, 4096  ;;  %p916_p10 = scmp.lt.s32.totalorder %s1197_s22, %s914_s7 }
  0x62   : > { %346 = vmatprep.subr.bf16.mxu0 %v828_v7  ;;  %742 = vmatprep.subr.bf16.mxu1 %v828_v7  ;;  %p911_p6 = pnand %p910_p4, %p1097_p12  ;;  %p917_p13 = scmp.lt.s32.totalorder %s915_s18, %s909_s5 }
  0x64   : > { %p912_p8 = pneg %p911_p6  ;;  %p918_p3 = por %p917_p13, %p916_p10 }
  0x65   : > { %347 = vmatpush1.bf16.msra.mxu0 %v830_v8  ;;  %750 = vmatpush1.bf16.msra.mxu1 %v830_v8 }
  0x66   : > { %348 = vmatprep.subr.bf16.mxu0 %v831_v9  ;;  %743 = vmatprep.subr.bf16.mxu1 %v831_v9  ;;  %p919_p7 = pnand %p918_p3, %p912_p8 }
  0x69   : > { %349 = vmatpush1.bf16.msra.mxu0 %v833_v10  ;;  %751 = vmatpush1.bf16.msra.mxu1 %v833_v10 }
  0x6a   : > { %350 = vmatprep.subr.bf16.mxu0 %v834_v11  ;;  %744 = vmatprep.subr.bf16.mxu1 %v834_v11 }
  0x6d   : > { %351 = vmatpush1.bf16.msra.mxu0 %v836_v12  ;;  %752 = vmatpush1.bf16.msra.mxu1 %v836_v12 }
  0x6e   : > { %352 = vmatprep.subr.bf16.mxu0 %v837_v13  ;;  %745 = vmatprep.subr.bf16.mxu1 %v837_v13 }
  0x71   : > { %353 = vmatpush1.bf16.msra.mxu0 %v839_v14  ;;  %753 = vmatpush1.bf16.msra.mxu1 %v839_v14 }
  0x72   : > { %354 = vmatprep.subr.bf16.mxu0 %v840_v15  ;;  %746 = vmatprep.subr.bf16.mxu1 %v840_v15 }
  0x75   : > { %355 = vmatpush1.bf16.msra.mxu0 %v842_v16  ;;  %754 = vmatpush1.bf16.msra.mxu1 %v842_v16 }
  0x78   : > { %373 = vmatmul.mubr.bf16.vlgmr.msra.gmra.mrb[0].mxu0 %v843_v17  ;;  %413 = vmatmul.mubr.bf16.vlgmr.msra.gmra.mrb[0].mxu1 %v844_v18 }
  0x79   : > { %382 = vmatprep.mubr.bf16.mxu0 %v987_v0  ;;  %422 = vmatprep.mubr.bf16.mxu1 %v987_v0 }
  0x80   : > { %383 = vmatmul.mubr.bf16.gmra.mrb[4].mxu0 %v845_v19  ;;  %423 = vmatmul.mubr.bf16.gmra.mrb[4].mxu1 %v846_v20 }
  0x81   : > { %392 = vmatprep.mubr.bf16.mxu0 %v987_v0  ;;  %432 = vmatprep.mubr.bf16.mxu1 %v987_v0 }
  0x88   : > { %393 = vmatmul.mubr.bf16.gmra.mrb[8].mxu0 %v847_v21  ;;  %433 = vmatmul.mubr.bf16.gmra.mrb[8].mxu1 %v848_v22 }
  0x89   : > { %402 = vmatprep.mubr.bf16.mxu0 %v987_v0  ;;  %442 = vmatprep.mubr.bf16.mxu1 %v987_v0 }
  0x90   : > { %403 = vmatmul.mubr.bf16.gmra.mrb[12].mxu0 %v849_v23  ;;  %443 = vmatmul.mubr.bf16.gmra.mrb[12].mxu1 %v850_v24 }
 0x14b   : > { %v374_v25 = vpop.f32.mrb[0].mxu0  ;;  %v414_v26 = vpop.f32.mrb[0].mxu1 }
 0x14c   : > { %v376_v27 = vpop.f32.mrb[1].mxu0  ;;  %v416_v28 = vpop.f32.mrb[1].mxu1 }
 0x14d   : > { %v721_v29 = vpack.c.bf16 %v376_v27, %v374_v25  ;;  %v729_v30 = vpack.c.bf16 %v416_v28, %v414_v26  ;;  %v378_v31 = vpop.f32.mrb[2].mxu0  ;;  %v418_v32 = vpop.f32.mrb[2].mxu1 }
 0x14e   : > { %v380_v33 = vpop.f32.mrb[3].mxu0  ;;  %v420_v34 = vpop.f32.mrb[3].mxu1 }
 0x14f   : > { %549 = vst [vmem:[%s1176_s17] sm:$0xff] %v721_v29  ;;  %557 = vst [vmem:[%s1176_s17 + $0x40] sm:$0xff] %v729_v30  ;;  %v722_v35 = vpack.c.bf16 %v380_v33, %v378_v31  ;;  %v730_v36 = vpack.c.bf16 %v420_v34, %v418_v32 }
 0x151   : > { %550 = vst [vmem:[%s1176_s17 + $0x8] sm:$0xff] %v722_v35  ;;  %558 = vst [vmem:[%s1176_s17 + $0x48] sm:$0xff] %v730_v36 }
 0x153   : > { %v384_v37 = vpop.f32.mrb[4].mxu0  ;;  %v424_v38 = vpop.f32.mrb[4].mxu1 }
 0x154   : > { %v386_v39 = vpop.f32.mrb[5].mxu0  ;;  %v426_v40 = vpop.f32.mrb[5].mxu1 }
 0x155   : > { %v723_v41 = vpack.c.bf16 %v386_v39, %v384_v37  ;;  %v731_v42 = vpack.c.bf16 %v426_v40, %v424_v38  ;;  %v388_v43 = vpop.f32.mrb[6].mxu0  ;;  %v428_v44 = vpop.f32.mrb[6].mxu1 }
 0x156   : > { %v390_v45 = vpop.f32.mrb[7].mxu0  ;;  %v430_v46 = vpop.f32.mrb[7].mxu1 }
 0x157   : > { %551 = vst [vmem:[%s1176_s17 + $0x10] sm:$0xff] %v723_v41  ;;  %559 = vst [vmem:[%s1176_s17 + $0x50] sm:$0xff] %v731_v42  ;;  %v724_v47 = vpack.c.bf16 %v390_v45, %v388_v43  ;;  %v732_v48 = vpack.c.bf16 %v430_v46, %v428_v44 }
 0x159   : > { %552 = vst [vmem:[%s1176_s17 + $0x18] sm:$0xff] %v724_v47  ;;  %560 = vst [vmem:[%s1176_s17 + $0x58] sm:$0xff] %v732_v48 }
 0x15b   : > { %v394_v49 = vpop.f32.mrb[8].mxu0  ;;  %v434_v50 = vpop.f32.mrb[8].mxu1 }
 0x15c   : > { %v396_v51 = vpop.f32.mrb[9].mxu0  ;;  %v436_v52 = vpop.f32.mrb[9].mxu1 }
 0x15d   : > { %v725_v53 = vpack.c.bf16 %v396_v51, %v394_v49  ;;  %v733_v54 = vpack.c.bf16 %v436_v52, %v434_v50  ;;  %v398_v55 = vpop.f32.mrb[10].mxu0  ;;  %v438_v56 = vpop.f32.mrb[10].mxu1 }
 0x15e   : > { %v400_v57 = vpop.f32.mrb[11].mxu0  ;;  %v440_v58 = vpop.f32.mrb[11].mxu1 }
 0x15f   : > { %553 = vst [vmem:[%s1176_s17 + $0x20] sm:$0xff] %v725_v53  ;;  %561 = vst [vmem:[%s1176_s17 + $0x60] sm:$0xff] %v733_v54  ;;  %v726_v59 = vpack.c.bf16 %v400_v57, %v398_v55  ;;  %v734_v60 = vpack.c.bf16 %v440_v58, %v438_v56 }
 0x161   : > { %554 = vst [vmem:[%s1176_s17 + $0x28] sm:$0xff] %v726_v59  ;;  %562 = vst [vmem:[%s1176_s17 + $0x68] sm:$0xff] %v734_v60 }
 0x163   : > { %v404_v61 = vpop.f32.mrb[12].mxu0  ;;  %v444_v62 = vpop.f32.mrb[12].mxu1 }
 0x164   : > { %v406_v63 = vpop.f32.mrb[13].mxu0  ;;  %v446_v0 = vpop.f32.mrb[13].mxu1 }
 0x165   : > { %v727_v1 = vpack.c.bf16 %v406_v63, %v404_v61  ;;  %v735_v2 = vpack.c.bf16 %v446_v0, %v444_v62  ;;  %v408_v3 = vpop.f32.mrb[14].mxu0  ;;  %v448_v4 = vpop.f32.mrb[14].mxu1 }
 0x166   : > { %v410_v5 = vpop.f32.mrb[15].mxu0  ;;  %v450_v6 = vpop.f32.mrb[15].mxu1 }
 0x167   : > { %555 = vst [vmem:[%s1176_s17 + $0x30] sm:$0xff] %v727_v1  ;;  %563 = vst [vmem:[%s1176_s17 + $0x70] sm:$0xff] %v735_v2  ;;  %v728_v7 = vpack.c.bf16 %v410_v5, %v408_v3  ;;  %v736_v8 = vpack.c.bf16 %v450_v6, %v448_v4 }
 0x169   : > { %556 = vst [vmem:[%s1176_s17 + $0x38] sm:$0xff] %v728_v7  ;;  %564 = vst [vmem:[%s1176_s17 + $0x78] sm:$0xff] %v736_v8 }
 0x16a   : > { %922 = shalt.err (!%p919_p7)
}
 0x16b   : > { %s923_s24 = scalar_lea.hbm %s1195_s4, 2048  ;;  %s927_s26 = scalar_lea.hbm %s1247_s2, 4096 }
 0x16c   : > { %p924_p9 = scmp.ne.s32.totalorder %s1195_s4, %s923_s24  ;;  %p928_p5 = scmp.lt.u32.totalorder %s1195_s4, %s1247_s2 }
 0x16d   : > { %p929_p11 = scmp.lt.u32.totalorder %s927_s26, %s923_s24  ;;  %p931_p4 = scmp.lt.u32.totalorder %s923_s24, %s1195_s4 }
 0x16e   : > { %p925_p2 = pnand %p924_p9, %p1097_p12 }
 0x16f   : > { %p930_p1 = por %p929_p11, %p928_p5 }
 0x170   : > { %p926_p0 = pneg %p925_p2 }
 0x171   : > { %p932_p6 = por %p931_p4, %p930_p1 }
 0x173   : > { %p933_p8 = pnand %p932_p6, %p926_p0 }
 0x175   : > { %936 = shalt.err (!%p933_p8)
}
 0x176   : > { %s989_s3 = smov 128   ;;  %s990_s15 = smov 8  }
 0x177   : > { %761 = dma.vmem_to_hbm [thread:$0]  (%p1097_p12), %s1197_s22, 2048, %s1195_s4, %s566_s13, %s989_s3, %s989_s3, %s990_s15  }
 0x178 PF: > { %s595_s17 = sand.u32 1, %s967_s9   ;;  %p1262_p10 = scmp.ne.s32.totalorder %s1252_s16, 0 }
 0x179   : > { %p1263_p13 = scmp.ge.s32.totalorder %s979_s12, 2  ;;  %s596_s27 = scalar_lea.sflag [#allocation4], %s595_s17 }
 0x17b   : > { %p772_p3 = pnand %p1263_p13, %p1262_p10 }
 0x17d   : > { %962 = dma.done.wait (!%p772_p3), %s596_s27, 2048  }
 0x17e   : > { %964 = vsyncadd (!%p772_p3), %s596_s27, 4294965248  ;;  %p16_p7 = scmp.ge.s32.totalorder %s1062_s21, 4   ;;  %s1264_s9 = smov %s971_s10 }
 0x17f   : > { %s1265_s10 = smov %s975_s11  ;;  %s1266_s11 = smov %s1093_s8 }
 0x180   : > { %s1267_s12 = smov %s1062_s21  ;;  %18 = sbr.rel (!%p16_p7) target bundleno = 6 (0x6), region = 77 }
 0x187   :  { %601 = vsyncpa [#allocation3], 1 }
 0x188   :  { %603 = vsyncpa [#allocation3 + $0x1], 1 }
 0x189   :  { %604 = vsyncpa [#allocation6], 1 }
 0x18a   :  { %605 = vsyncpa [#allocation4], 1 }
 0x18b   :  { %607 = vsyncpa [#allocation4 + $0x1], 1 }

</bundles_post_ra>
